<compile_context>
chip_gen: v6e
topology: v6e:2x2x1
jax: 0.10.0
libtpu: 0.0.40
codegen_flags: <defaults>
</compile_context>

<pallas_src>
import functools

import jax
import jax.numpy as jnp
from jax.experimental import pallas as pl
from jax.experimental.pallas import tpu as pltpu


def _round_up(x: int, m: int) -> int:
    return (x + m - 1) // m * m


def _make_kernel(use_mask: bool, a_valid: int, a_pad: int):
    def kernel(*refs):
        if use_mask:
            (att_h_ref, p_att_ref, feats_ref, wa_ref, mask_ref,
             res_ref, w_ref) = refs
        else:
            (att_h_ref, p_att_ref, feats_ref, wa_ref,
             res_ref, w_ref) = refs

        f32 = jnp.float32

        att_h = att_h_ref[...].astype(f32)            # [TB, Hp]
        p_att = p_att_ref[...].astype(f32)            # [TB, Ap, Hp]
        wa = wa_ref[...].astype(f32)                  # [1, 1, Hp]

        # tanh(p_att_feats + h2att(h)) -- broadcast att_h over att_size.
        dot = jnp.tanh(p_att + att_h[:, None, :])     # [TB, Ap, Hp]

        # alpha_net without bias: VPU multiply + cross-lane (H) reduce.
        # (b_alpha is a constant added to every score; softmax cancels it.)
        scores = jnp.sum(dot * wa, axis=-1)           # [TB, Ap]

        if a_pad != a_valid:
            lane = jax.lax.broadcasted_iota(jnp.int32, scores.shape, 1)
            scores = jnp.where(lane < a_valid, scores, -jnp.inf)

        # softmax over att_size (lane axis of [TB, Ap]).
        m = jnp.max(scores, axis=-1, keepdims=True)
        e = jnp.exp(scores - m)
        weight = e / jnp.sum(e, axis=-1, keepdims=True)

        if use_mask:
            mask = mask_ref[...].astype(f32)          # [TB, Ap]
            weight = weight * mask
            weight = weight / (jnp.sum(weight, axis=-1, keepdims=True) + 1e-10)

        # att_res: VPU multiply + cross-sublane (A) reduce; no M=1 matmul.
        feats = feats_ref[...].astype(f32)            # [TB, Ap, Dp]
        res = jnp.sum(weight[:, :, None] * feats, axis=1)   # [TB, Dp]

        res_ref[...] = res.astype(res_ref.dtype)
        w_ref[...] = weight.astype(w_ref.dtype)

    return kernel


def _choose_block_b(B: int, A_p: int, H_p: int, D_p: int, itemsize: int) -> int:
    """Largest TB (multiple of 8, <=32) whose double-buffered big-input tiles
    fit a conservative VMEM budget (safe on v7x's 64 MiB physical VMEM)."""
    budget = 24 << 20
    tb = 32
    while tb > 8 and 2 * tb * A_p * (H_p + D_p) * itemsize > budget:
        tb -= 8
    # Prefer >=2 grid steps so the "parallel" batch axis can shard across
    # v7x's two TensorCores.
    b8 = _round_up(B, 8)
    tb = min(tb, max(8, _round_up(max(b8 // 2, 1), 8)))
    return tb


@functools.partial(jax.jit, static_argnames=("use_mask", "io_dtype", "block_b"))
def attention2_pallas(h, att_feats, p_att_feats, params, att_masks=None,
                      use_mask=False, io_dtype=jnp.float32, block_b=None):
    W_h2att, b_h2att, w_alpha, b_alpha = params
    del b_alpha  # cancels inside the softmax (shift invariance)

    B = att_feats.shape[0]
    D = att_feats.shape[-1]
    A = att_feats.size // B // D
    H = W_h2att.shape[1]

    f32 = jnp.float32

    # Hoisted h2att linear: one dense [B,R]x[R,H] XLA matmul outside the kernel.
    att_h = (h.reshape(B, -1).astype(f32) @ W_h2att.astype(f32)
             + b_h2att.astype(f32))                                 # [B, H]

    att = p_att_feats.reshape(B, A, H).astype(f32)
    feats = att_feats.reshape(B, A, D).astype(f32)

    # Padded (dense-tile) extents.
    A_p = _round_up(A, 8)
    H_p = _round_up(H, 128)
    D_p = _round_up(D, 128)

    itemsize = jnp.dtype(io_dtype).itemsize
    if block_b is None:
        tb = _choose_block_b(B, A_p, H_p, D_p, itemsize)
    else:
        tb = _round_up(int(block_b), 8)
    B_p = _round_up(B, tb)
    grid = (B_p // tb,)

    def pad_to(x, shape):
        pads = [(0, t - s) for s, t in zip(x.shape, shape)]
        if any(p[1] for p in pads):
            x = jnp.pad(x, pads)
        return x

    att_h_p = pad_to(att_h, (B_p, H_p)).astype(io_dtype)
    att_p = pad_to(att, (B_p, A_p, H_p)).astype(io_dtype)
    feats_p = pad_to(feats, (B_p, A_p, D_p)).astype(io_dtype)
    wa_p = pad_to(w_alpha.reshape(1, 1, H).astype(f32), (1, 1, H_p))

    in_specs = [
        pl.BlockSpec((tb, H_p), lambda i: (i, 0)),            # att_h
        pl.BlockSpec((tb, A_p, H_p), lambda i: (i, 0, 0)),    # p_att_feats
        pl.BlockSpec((tb, A_p, D_p), lambda i: (i, 0, 0)),    # att_feats
        pl.BlockSpec((1, 1, H_p), lambda i: (0, 0, 0)),       # w_alpha
    ]
    inputs = [att_h_p, att_p, feats_p, wa_p]

    if use_mask:
        mask_p = pad_to(att_masks.reshape(B, A).astype(f32),
                        (B_p, A_p)).astype(io_dtype)
        in_specs.append(pl.BlockSpec((tb, A_p), lambda i: (i, 0)))
        inputs.append(mask_p)

    out_shapes = (
        jax.ShapeDtypeStruct((B_p, D_p), f32),   # att_res (padded)
        jax.ShapeDtypeStruct((B_p, A_p), f32),   # weight  (padded)
    )
    out_specs = (
        pl.BlockSpec((tb, D_p), lambda i: (i, 0)),
        pl.BlockSpec((tb, A_p), lambda i: (i, 0)),
    )

    # Explicit VMEM budget: double-buffered big inputs + f32 temporaries.
    big_tile_bytes = tb * A_p * (H_p + D_p) * itemsize
    vmem_limit = int(min(max(6 * big_tile_bytes + (4 << 20), 32 << 20),
                         64 << 20))

    res, weight = pl.pallas_call(
        _make_kernel(use_mask, A, A_p),
        out_shape=out_shapes,
        grid_spec=pltpu.PrefetchScalarGridSpec(
            num_scalar_prefetch=0,
            grid=grid,
            in_specs=in_specs,
            out_specs=out_specs,
        ),
        compiler_params=pltpu.CompilerParams(
            dimension_semantics=("parallel",),
            vmem_limit_bytes=vmem_limit,
        ),
    )(*inputs)

    return res[:B, :D], weight[:B, :A]


def attention2_reference(h, att_feats, p_att_feats, params, att_masks=None):
    """Pure-JAX reference matching the PyTorch forward exactly."""
    W_h2att, b_h2att, w_alpha, b_alpha = params
    B = att_feats.shape[0]
    D = att_feats.shape[-1]
    A = att_feats.size // B // D
    H = W_h2att.shape[1]
    att = p_att_feats.reshape(B, A, H)
    att_h = h @ W_h2att + b_h2att                           # [B, H]
    dot = jnp.tanh(att + att_h[:, None, :])                 # [B, A, H]
    scores = jnp.einsum("bah,h->ba", dot, w_alpha[0]) + b_alpha[0, 0]
    weight = jax.nn.softmax(scores, axis=1)
    if att_masks is not None:
        weight = weight * att_masks.reshape(B, A).astype(jnp.float32)
        weight = weight / (weight.sum(1, keepdims=True) + 1e-10)
    att_res = jnp.einsum("ba,bad->bd", weight, att_feats.reshape(B, A, D))
    return att_res, weight


if __name__ == "__main__":
    # Small shapes consistent with the module.
    B = 2
    input_size = 1
    rnn_size = 32
    att_hid_size = 32
    att_size = 16
    feat_dim = rnn_size

    key = jax.random.PRNGKey(0)
    k1, k2, k3, k4, k5, k6, k7, k8 = jax.random.split(key, 8)

    # Deterministic parameter init (shapes from nn.Linear definitions).
    W_h2att = jax.random.normal(k1, (input_size * rnn_size, att_hid_size),
                                jnp.float32) * 0.1
    b_h2att = jax.random.normal(k2, (1, att_hid_size), jnp.float32) * 0.1
    w_alpha = jax.random.normal(k3, (1, att_hid_size), jnp.float32) * 0.1
    b_alpha = jax.random.normal(k4, (1, 1), jnp.float32) * 0.1
    params = (W_h2att, b_h2att, w_alpha, b_alpha)

    # Inputs.
    h = jax.random.normal(k5, (B, input_size * rnn_size), jnp.float32)
    att_feats = jax.random.normal(k6, (B, att_size, feat_dim), jnp.float32)
    p_att_feats = jax.random.normal(k7, (B, att_size, att_hid_size),
                                    jnp.float32)
    att_masks = (jax.random.uniform(k8, (B, att_size)) > 0.3).astype(
        jnp.float32)

    # --- f32 I/O, no mask ---
    res, w = attention2_pallas(h, att_feats, p_att_feats, params,
                               use_mask=False)
    jax.block_until_ready((res, w))
    res_ref, w_ref = attention2_reference(h, att_feats, p_att_feats, params)
    assert jnp.allclose(res, res_ref, atol=1e-5, rtol=1e-5), "att_res mismatch"
    assert jnp.allclose(w, w_ref, atol=1e-5, rtol=1e-5), "weight mismatch"

    # --- f32 I/O, with mask ---
    res_m, w_m = attention2_pallas(h, att_feats, p_att_feats, params,
                                   att_masks=att_masks, use_mask=True)
    jax.block_until_ready((res_m, w_m))
    res_mr, w_mr = attention2_reference(h, att_feats, p_att_feats, params,
                                        att_masks=att_masks)
    assert jnp.allclose(res_m, res_mr, atol=1e-5, rtol=1e-5), \
        "masked att_res mismatch"
    assert jnp.allclose(w_m, w_mr, atol=1e-5, rtol=1e-5), \
        "masked weight mismatch"

    # --- bf16 I/O (bandwidth-optimized DMA path), no mask ---
    res_b, w_b = attention2_pallas(h, att_feats, p_att_feats, params,
                                   use_mask=False, io_dtype=jnp.bfloat16)
    jax.block_until_ready((res_b, w_b))
    assert jnp.allclose(res_b, res_ref, atol=2e-2, rtol=2e-2), \
        "bf16 att_res mismatch"
    assert jnp.allclose(w_b, w_ref, atol=2e-2, rtol=2e-2), \
        "bf16 weight mismatch"

    print("KERNEL_OK")
</pallas_src>

<mosaic_0001>
module attributes {stable_mosaic.version = 11 : i64} {
  func.func @kernel(%arg0: i32, %arg1: memref<8x128xf32, #tpu.memory_space<vmem>>, %arg2: memref<8x16x128xf32, #tpu.memory_space<vmem>>, %arg3: memref<8x16x128xf32, #tpu.memory_space<vmem>>, %arg4: memref<1x1x128xf32, #tpu.memory_space<vmem>>, %arg5: memref<8x128xf32, #tpu.memory_space<vmem>>, %arg6: memref<8x16xf32, #tpu.memory_space<vmem>>) attributes {dimension_semantics = [#tpu.dimension_semantics<parallel>], iteration_bounds = array<i64: 1>, scalar_prefetch = 0 : i64, scratch_operands = 0 : i64, tpu.core_type = #tpu.core_type<tc>, window_params = [{transform_indices = @transform_0, window_bounds = array<i64: 8, 128>}, {transform_indices = @transform_1, window_bounds = array<i64: 8, 16, 128>}, {transform_indices = @transform_2, window_bounds = array<i64: 8, 16, 128>}, {pipeline_mode = #tpu.pipeline_mode<synchronous>, transform_indices = @transform_3, window_bounds = array<i64: 1, 1, 128>}, {transform_indices = @transform_4, window_bounds = array<i64: 8, 128>}, {transform_indices = @transform_5, window_bounds = array<i64: 8, 16>}]} {
    %c0 = arith.constant 0 : index
    %c0_0 = arith.constant 0 : index
    %0 = vector.load %arg1[%c0, %c0_0] : memref<8x128xf32, #tpu.memory_space<vmem>>, vector<8x128xf32>
    %c0_1 = arith.constant 0 : index
    %c0_2 = arith.constant 0 : index
    %c0_3 = arith.constant 0 : index
    %1 = vector.load %arg2[%c0_1, %c0_2, %c0_3] : memref<8x16x128xf32, #tpu.memory_space<vmem>>, vector<8x16x128xf32>
    %c0_4 = arith.constant 0 : index
    %c0_5 = arith.constant 0 : index
    %c0_6 = arith.constant 0 : index
    %2 = vector.load %arg4[%c0_4, %c0_5, %c0_6] : memref<1x1x128xf32, #tpu.memory_space<vmem>>, vector<1x1x128xf32>
    %3 = vector.shape_cast %0 : vector<8x128xf32> to vector<8x1x128xf32>
    %4 = vector.broadcast %3 : vector<8x1x128xf32> to vector<8x16x128xf32>
    %5 = arith.addf %1, %4 : vector<8x16x128xf32>
    %6 = math.tanh %5 : vector<8x16x128xf32>
    %7 = vector.broadcast %2 : vector<1x1x128xf32> to vector<8x16x128xf32>
    %8 = arith.mulf %6, %7 : vector<8x16x128xf32>
    %cst = arith.constant dense<0.000000e+00> : vector<8x16xf32>
    %9 = vector.multi_reduction <add>, %8, %cst [2] : vector<8x16x128xf32> to vector<8x16xf32>
    %cst_7 = arith.constant dense<0xFF800000> : vector<8xf32>
    %10 = vector.multi_reduction <maximumf>, %9, %cst_7 [1] : vector<8x16xf32> to vector<8xf32>
    %11 = vector.shape_cast %10 : vector<8xf32> to vector<8x1xf32>
    %12 = vector.broadcast %11 : vector<8x1xf32> to vector<8x16xf32>
    %13 = arith.subf %9, %12 : vector<8x16xf32>
    %14 = math.exp %13 : vector<8x16xf32>
    %cst_8 = arith.constant dense<0.000000e+00> : vector<8xf32>
    %15 = vector.multi_reduction <add>, %14, %cst_8 [1] : vector<8x16xf32> to vector<8xf32>
    %16 = vector.shape_cast %15 : vector<8xf32> to vector<8x1xf32>
    %17 = vector.broadcast %16 : vector<8x1xf32> to vector<8x16xf32>
    %18 = arith.divf %14, %17 : vector<8x16xf32>
    %c0_9 = arith.constant 0 : index
    %c0_10 = arith.constant 0 : index
    %c0_11 = arith.constant 0 : index
    %19 = vector.load %arg3[%c0_9, %c0_10, %c0_11] : memref<8x16x128xf32, #tpu.memory_space<vmem>>, vector<8x16x128xf32>
    %20 = vector.shape_cast %18 : vector<8x16xf32> to vector<8x16x1xf32>
    %21 = vector.broadcast %20 : vector<8x16x1xf32> to vector<8x16x128xf32>
    %22 = arith.mulf %21, %19 : vector<8x16x128xf32>
    %cst_12 = arith.constant dense<0.000000e+00> : vector<8x128xf32>
    %23 = vector.multi_reduction <add>, %22, %cst_12 [1] : vector<8x16x128xf32> to vector<8x128xf32>
    %c0_13 = arith.constant 0 : index
    %c0_14 = arith.constant 0 : index
    %24 = vector.load %arg5[%c0_13, %c0_14] : memref<8x128xf32, #tpu.memory_space<vmem>>, vector<8x128xf32>
    tpu.vector_store %arg5[%c0_13, %c0_14], %23 {strides = array<i32>} : memref<8x128xf32, #tpu.memory_space<vmem>>, vector<8x128xf32>,
    %c0_15 = arith.constant 0 : index
    %c0_16 = arith.constant 0 : index
    %25 = vector.load %arg6[%c0_15, %c0_16] : memref<8x16xf32, #tpu.memory_space<vmem>>, vector<8x16xf32>
    tpu.vector_store %arg6[%c0_15, %c0_16], %18 {strides = array<i32>} : memref<8x16xf32, #tpu.memory_space<vmem>>, vector<8x16xf32>,
    return
  }
  func.func @transform_0(%arg0: i32) -> (i32, i32) {
    %c0_i32 = arith.constant 0 : i32
    %c0_i32_0 = arith.constant 0 : i32
    return %arg0, %c0_i32 : i32, i32
  }
  func.func @transform_1(%arg0: i32) -> (i32, i32, i32) {
    %c0_i32 = arith.constant 0 : i32
    %c0_i32_0 = arith.constant 0 : i32
    %c0_i32_1 = arith.constant 0 : i32
    return %arg0, %c0_i32, %c0_i32_0 : i32, i32, i32
  }
  func.func @transform_2(%arg0: i32) -> (i32, i32, i32) {
    %c0_i32 = arith.constant 0 : i32
    %c0_i32_0 = arith.constant 0 : i32
    %c0_i32_1 = arith.constant 0 : i32
    return %arg0, %c0_i32, %c0_i32_0 : i32, i32, i32
  }
  func.func @transform_3(%arg0: i32) -> (i32, i32, i32) {
    %c0_i32 = arith.constant 0 : i32
    %c0_i32_0 = arith.constant 0 : i32
    %c0_i32_1 = arith.constant 0 : i32
    %c0_i32_2 = arith.constant 0 : i32
    return %c0_i32, %c0_i32_0, %c0_i32_1 : i32, i32, i32
  }
  func.func @transform_4(%arg0: i32) -> (i32, i32) {
    %c0_i32 = arith.constant 0 : i32
    %c0_i32_0 = arith.constant 0 : i32
    return %arg0, %c0_i32 : i32, i32
  }
  func.func @transform_5(%arg0: i32) -> (i32, i32) {
    %c0_i32 = arith.constant 0 : i32
    %c0_i32_0 = arith.constant 0 : i32
    return %arg0, %c0_i32 : i32, i32
  }
}

</mosaic_0001>

<bundles_post_ra>
// kernel: attention2_pallas.1
= control target key start
LH: loop header
LB: loop body
LE: loop exit
PB: predicated region body
PF: predicated region fallthrough
CT: control target
= control target key end

     0   :  { %v42_v0 = vlaneseq  ;;  %v985_v2 = vmov 1966171168   ;;  %vm240_vm0 = vcmask 130112   ;;  %vm305_vm1 = vcmask 1041409   ;;  %s1465_s0 = inlined_call_operand.vmem [shape: f32[8,128], index: 0, kind: input, shape index: {}]   ;;  %s1466_s1 = inlined_call_operand.vmem [shape: f32[8,16,128], index: 1, kind: input, shape index: {}]   ;;  %s1467_s3 = inlined_call_operand.vmem [shape: f32[1,1,128], index: 3, kind: input, shape index: {}]   ;;  %s1468_s2 = inlined_call_operand.vmem [shape: f32[8,16,128], index: 2, kind: input, shape index: {}]   ;;  %s1469_s5 = inlined_call_operand.vmem [shape: f32[8,16], index: 5, kind: output, shape index: {1}]   ;;  %s1470_s4 = inlined_call_operand.vmem [shape: f32[8,128], index: 4, kind: output, shape index: {0}]  }
   0x1   :  { %v19_v1 = vld [vmem:[%s1465_s0] sm:$0xff]  ;;  %v40_v3 = vunpack.c.l.s4 %v985_v2  ;;  %v29_v15 = vld [vmem:[%s1466_s1 + $0x48] sm:$0xff]  ;;  %v22_v22 = vld [vmem:[%s1466_s1 + $0x10] sm:$0xff]  ;;  %vm307_vm2 = vcmask 1042434   ;;  %vm309_vm3 = vcmask 1043459   ;;  %vm311_vm4 = vcmask 1044484  }
   0x2   :  { %v1021_v4 = vshrl.u32 %v42_v0, 7  ;;  %v38_v6 = vcombine.high %v19_v1, %v19_v1  ;;  %v20_v14 = vld [vmem:[%s1466_s1] sm:$0xff]  ;;  %v21_v16 = vld [vmem:[%s1466_s1 + $0x8] sm:$0xff]  ;;  %v23_v23 = vld [vmem:[%s1466_s1 + $0x18] sm:$0xff]  ;;  %vm313_vm5 = vcmask 1045509   ;;  %vm315_vm6 = vcmask 1046534  }
   0x3   :  { %v41_v5 = vunpack.c.0.s8 %v40_v3  ;;  %v28_v28 = vld [vmem:[%s1466_s1 + $0x40] sm:$0xff]  ;;  %v25_v35 = vld [vmem:[%s1466_s1 + $0x28] sm:$0xff]  ;;  %v30_v40 = vld [vmem:[%s1466_s1 + $0x50] sm:$0xff]  ;;  %vm317_vm7 = vcmask 1047559   ;;  %vm320_vm8 = vcmask 130048  }
   0x4   :  { %v1025_v9 = vsub.s32 0, %v1021_v4  ;;  %v24_v34 = vld [vmem:[%s1466_s1 + $0x20] sm:$0xff]  ;;  %v31_v41 = vld [vmem:[%s1466_s1 + $0x58] sm:$0xff]  ;;  %v33_v47 = vld [vmem:[%s1466_s1 + $0x68] sm:$0xff] }
   0x5   :  { %v44_v7 = vsub.s32 %v41_v5, %v1021_v4  ;;  %v32_v46 = vld [vmem:[%s1466_s1 + $0x60] sm:$0xff]  ;;  %v26_v54 = vld [vmem:[%s1466_s1 + $0x30] sm:$0xff]  ;;  %v27_v57 = vld [vmem:[%s1466_s1 + $0x38] sm:$0xff] }
   0x6   :  { %v1072_v48 = vld [vmem:[%s1467_s3] ss:$0 sm:$0xff]  ;;  %v34_v5 = vld [vmem:[%s1466_s1 + $0x70] sm:$0xff] }
   0x7   :  { %v45_v8 = vrot.slane %v19_v1, %v44_v7  ;;  %v52_v10 = vrot.slane %v38_v6, %v44_v7 }
   0x9   :  { %v61_v11 = vrot.slane %v45_v8, %v44_v7  ;;  %v68_v12 = vrot.slane %v52_v10, %v44_v7  ;;  %v53_v13 = vcombine.high %v45_v8, %v45_v8  ;;  %v54_v17 = vcombine.high %v52_v10, %v52_v10 }
   0xb   :  { %v90_v18 = vrot.slane %v61_v11, %v1025_v9  ;;  %v106_v19 = vrot.slane %v68_v12, %v1025_v9  ;;  %v75_v20 = vrot.slane %v53_v13, %v44_v7  ;;  %v83_v21 = vcombine.high %v61_v11, %v61_v11 }
   0xc   :  { %v82_v29 = vrot.slane %v54_v17, %v44_v7  ;;  %v84_v38 = vcombine.high %v68_v12, %v68_v12  ;;  %v35_v7 = vld [vmem:[%s1466_s1 + $0x78] sm:$0xff] }
   0xd   :  { %v127_v24 = vadd.f32 %v90_v18, %v20_v14  ;;  %v136_v25 = vadd.f32 %v106_v19, %v29_v15  ;;  %v128_v26 = vadd.f32 %v90_v18, %v21_v16  ;;  %v94_v27 = vrot.slane %v75_v20, %v1025_v9 }
   0xe   :  { %v98_v32 = vrot.slane %v83_v21, %v1025_v9  ;;  %v135_v33 = vadd.f32 %v106_v19, %v28_v28  ;;  %v110_v37 = vrot.slane %v82_v29, %v1025_v9  ;;  %v114_v43 = vrot.slane %v84_v38, %v1025_v9 }
   0xf   :  { %905 = vtanh.f32 %v127_v24  ;;  %v129_v30 = vadd.f32 %v94_v27, %v22_v22  ;;  %v130_v31 = vadd.f32 %v94_v27, %v23_v23  ;;  %v85_v44 = vcombine.high %v75_v20, %v75_v20 }
  0x10   :  { %907 = vtanh.f32 %v136_v25  ;;  %v131_v36 = vadd.f32 %v98_v32, %v24_v34  ;;  %v132_v39 = vadd.f32 %v98_v32, %v25_v35  ;;  %v137_v42 = vadd.f32 %v110_v37, %v30_v40 }
  0x11   :  { %909 = vtanh.f32 %v128_v26  ;;  %v138_v45 = vadd.f32 %v110_v37, %v31_v41  ;;  %v139_v49 = vadd.f32 %v114_v43, %v32_v46  ;;  %v102_v50 = vrot.slane %v85_v44, %v1025_v9 }
  0x12   :  { %911 = vtanh.f32 %v129_v30  ;;  %v86_v51 = vcombine.high %v82_v29, %v82_v29  ;;  %v140_v53 = vadd.f32 %v114_v43, %v33_v47 }
  0x13   :  { %913 = vtanh.f32 %v130_v31  ;;  %v133_v62 = vadd.f32 %v102_v50, %v26_v54  ;;  %v134_v3 = vadd.f32 %v102_v50, %v27_v57 }
  0x14   :  { %915 = vtanh.f32 %v135_v33  ;;  %v118_v63 = vrot.slane %v86_v51, %v1025_v9 }
  0x15   :  { %917 = vtanh.f32 %v131_v36 }
  0x16   :  { %919 = vtanh.f32 %v132_v39  ;;  %v141_v10 = vadd.f32 %v118_v63, %v34_v5  ;;  %v142_v13 = vadd.f32 %v118_v63, %v35_v7  ;;  %v230_v39 = vand.u32 127, %v42_v0 }
  0x17   :  { %921 = vtanh.f32 %v137_v42 }
  0x18   :  { %923 = vtanh.f32 %v138_v45  ;;  %v235_v42 = vadd.s32 4294967288, %v230_v39  ;;  %v1129_v46 = vsub.s32 %v230_v39, %v1021_v4  ;;  %v351_v39 = vsub.s32 6, %v1021_v4 }
  0x19   :  { %925 = vtanh.f32 %v139_v49 }
  0x1a   :  { %927 = vtanh.f32 %v140_v53  ;;  %v1126_v45 = vsub.s32 %v235_v42, %v1021_v4 }
  0x1b   :  { %929 = vtanh.f32 %v133_v62 }
  0x1c   :  { %v906_v52 = vpop.eup %905  ;;  %931 = vtanh.f32 %v134_v3 }
  0x1d   :  { %v908_v55 = vpop.eup %907  ;;  %v165_v56 = vmul.f32 %v906_v52, %v1072_v48  ;;  %933 = vtanh.f32 %v141_v10 }
  0x1e   :  { %v910_v58 = vpop.eup %909  ;;  %v174_v59 = vmul.f32 %v908_v55, %v1072_v48  ;;  %935 = vtanh.f32 %v142_v13 }
  0x1f   :  { %v912_v60 = vpop.eup %911  ;;  %181 = vadd.xlane.f32.xlu0 %v165_v56  ;;  %v166_v61 = vmul.f32 %v910_v58, %v1072_v48 }
  0x20   :  { %v914_v1 = vpop.eup %913  ;;  %199 = vadd.xlane.f32.xlu1 %v174_v59  ;;  %v167_v2 = vmul.f32 %v912_v60, %v1072_v48 }
  0x21   :  { %v916_v6 = vpop.eup %915  ;;  %v168_v12 = vmul.f32 %v914_v1, %v1072_v48 }
  0x22   :  { %v173_v8 = vmul.f32 %v916_v6, %v1072_v48  ;;  %v918_v11 = vpop.eup %917 }
  0x23   :  { %183 = vadd.xlane.f32.xlu0 %v166_v61  ;;  %v920_v14 = vpop.eup %919  ;;  %v169_v15 = vmul.f32 %v918_v11, %v1072_v48 }
  0x24   :  { %185 = vadd.xlane.f32.xlu1 %v167_v2  ;;  %v922_v16 = vpop.eup %921  ;;  %v170_v17 = vmul.f32 %v920_v14, %v1072_v48 }
  0x25   :  { %v924_v18 = vpop.eup %923  ;;  %v175_v19 = vmul.f32 %v922_v16, %v1072_v48 }
  0x26   :  { %v926_v20 = vpop.eup %925  ;;  %v176_v21 = vmul.f32 %v924_v18, %v1072_v48 }
  0x27   :  { %197 = vadd.xlane.f32.xlu0 %v173_v8  ;;  %v928_v22 = vpop.eup %927  ;;  %v177_v23 = vmul.f32 %v926_v20, %v1072_v48 }
  0x28   :  { %187 = vadd.xlane.f32.xlu1 %v168_v12  ;;  %v930_v24 = vpop.eup %929  ;;  %v178_v25 = vmul.f32 %v928_v22, %v1072_v48 }
  0x29   :  { %v932_v26 = vpop.eup %931  ;;  %v171_v27 = vmul.f32 %v930_v24, %v1072_v48  ;;  %v331_v24 = vsub.s32 1, %v1021_v4 }
  0x2a   :  { %v934_v28 = vpop.eup %933  ;;  %v172_v29 = vmul.f32 %v932_v26, %v1072_v48 }
  0x2b   :  { %189 = vadd.xlane.f32.xlu0 %v169_v15  ;;  %v936_v30 = vpop.eup %935  ;;  %v179_v31 = vmul.f32 %v934_v28, %v1072_v48  ;;  %v347_v28 = vsub.s32 5, %v1021_v4 }
  0x2c   :  { %191 = vadd.xlane.f32.xlu1 %v170_v17  ;;  %v180_v32 = vmul.f32 %v936_v30, %v1072_v48 }
  0x2f   :  { %201 = vadd.xlane.f32.xlu0 %v175_v19 }
  0x30   :  { %203 = vadd.xlane.f32.xlu1 %v176_v21 }
  0x33   :  { %205 = vadd.xlane.f32.xlu0 %v177_v23  ;;  %v986_v23 = vmov 0  }
  0x34   :  { %207 = vadd.xlane.f32.xlu1 %v178_v25  ;;  %903 = vset.pattern.permute.xlu0 %v986_v23 }
  0x35   :  { %902 = vset.pattern.permute.xlu1 %v986_v23 }
  0x37   :  { %193 = vadd.xlane.f32.xlu0 %v171_v27 }
  0x38   :  { %195 = vadd.xlane.f32.xlu1 %v172_v29 }
  0x3b   :  { %209 = vadd.xlane.f32.xlu0 %v179_v31  ;;  %v335_v31 = vsub.s32 2, %v1021_v4 }
  0x3c   :  { %211 = vadd.xlane.f32.xlu1 %v180_v32 }
  0xa8   :  { %v1104_v33 = vpop.xlane.xlu0 %181 }
  0xa9   :  { %v1106_v34 = vpop.xlane.xlu1 %199  ;;  %v234_v53 = vrot.slane %v1104_v33, %v1129_v46 }
  0xaa   :  { %v276_v1 = vrot.slane %v1106_v34, %v1126_v45 }
  0xac   :  { %v1108_v35 = vpop.xlane.xlu0 %183 }
  0xad   :  { %v1110_v36 = vpop.xlane.xlu1 %185  ;;  %v239_v51 = vrot.slane %v1108_v35, %v1126_v45 }
  0xae   :  { %v245_v52 = vrot.slane %v1110_v36, %v1129_v46 }
  0xaf   :  { %v241_v60 = vsel %vm240_vm0, %v239_v51, %v234_v53  ;;  %v339_v53 = vsub.s32 3, %v1021_v4 }
  0xb0   :  { %v1112_v37 = vpop.xlane.xlu0 %197 }
  0xb1   :  { %v1114_v38 = vpop.xlane.xlu1 %187  ;;  %v272_v56 = vrot.slane %v1112_v37, %v1129_v46 }
  0xb2   :  { %v249_v47 = vrot.slane %v1114_v38, %v1126_v45 }
  0xb3   :  { %v277_v10 = vsel %vm240_vm0, %v276_v1, %v272_v56 }
  0xb4   :  { %v1117_v40 = vpop.xlane.xlu0 %189  ;;  %v250_v54 = vsel %vm240_vm0, %v249_v47, %v245_v52 }
  0xb5   :  { %v1119_v41 = vpop.xlane.xlu1 %191  ;;  %v254_v49 = vrot.slane %v1117_v40, %v1129_v46  ;;  %v306_v2 = vsel %vm305_vm1, %v250_v54, %v241_v60 }
  0xb6   :  { %v258_v0 = vrot.slane %v1119_v41, %v1126_v45 }
  0xb8   :  { %v1121_v43 = vpop.xlane.xlu0 %201  ;;  %v259_v57 = vsel %vm240_vm0, %v258_v0, %v254_v49 }
  0xb9   :  { %v1123_v44 = vpop.xlane.xlu1 %203  ;;  %v281_v62 = vrot.slane %v1121_v43, %v1129_v46  ;;  %v308_v6 = vsel %vm307_vm2, %v259_v57, %v306_v2 }
  0xba   :  { %v285_v61 = vrot.slane %v1123_v44, %v1126_v45 }
  0xbc   :  { %v1133_v48 = vpop.xlane.xlu0 %205  ;;  %v286_v14 = vsel %vm240_vm0, %v285_v61, %v281_v62 }
  0xbd   :  { %v1139_v50 = vpop.xlane.xlu1 %207  ;;  %v290_v5 = vrot.slane %v1133_v48, %v1129_v46 }
  0xbe   :  { %v294_v3 = vrot.slane %v1139_v50, %v1126_v45 }
  0xc0   :  { %v1148_v55 = vpop.xlane.xlu0 %193  ;;  %v295_v17 = vsel %vm240_vm0, %v294_v3, %v290_v5 }
  0xc1   :  { %v1153_v58 = vpop.xlane.xlu1 %195  ;;  %v263_v59 = vrot.slane %v1148_v55, %v1129_v46 }
  0xc2   :  { %v267_v63 = vrot.slane %v1153_v58, %v1126_v45 }
  0xc4   :  { %v268_v7 = vsel %vm240_vm0, %v267_v63, %v263_v59  ;;  %v1173_v8 = vpop.xlane.xlu0 %209 }
  0xc5   :  { %v310_v11 = vsel %vm309_vm3, %v268_v7, %v308_v6  ;;  %v1177_v12 = vpop.xlane.xlu1 %211  ;;  %v299_v13 = vrot.slane %v1173_v8, %v1129_v46 }
  0xc6   :  { %v303_v15 = vrot.slane %v1177_v12, %v1126_v45  ;;  %v312_v16 = vsel %vm311_vm4, %v277_v10, %v310_v11 }
  0xc7   :  { %v314_v18 = vsel %vm313_vm5, %v286_v14, %v312_v16 }
  0xc8   :  { %v304_v19 = vsel %vm240_vm0, %v303_v15, %v299_v13  ;;  %v316_v20 = vsel %vm315_vm6, %v295_v17, %v314_v18 }
  0xc9   :  { %v318_v21 = vsel %vm317_vm7, %v304_v19, %v316_v20 }
  0xca   :  { %v321_v22 = vsel %vm320_vm8, %v318_v21, -inf }
  0xcb   :  { %322 = vmax.xlane.f32.xlu0 %v321_v22 }
 0x154   :  { %v323_v25 = vpop.xlane.xlu0 %322 }
 0x155   :  { %v328_v26 = vrot.slane %v323_v25, %v1025_v9  ;;  %v332_v27 = vrot.slane %v323_v25, %v331_v24  ;;  %v1203_v42 = vrot.slane %v323_v25, %v347_v28  ;;  %v336_v49 = vrot.slane %v323_v25, %v335_v31 }
 0x156   :  { %v340_v60 = vrot.slane %v323_v25, %v339_v53 }
 0x157   :  { %v365_v29 = vsub.f32 %v1104_v33, %v328_v26  ;;  %v366_v30 = vsub.f32 %v1108_v35, %v328_v26  ;;  %v367_v32 = vsub.f32 %v1110_v36, %v332_v27  ;;  %v368_v51 = vsub.f32 %v1114_v38, %v332_v27 }
 0x158   :  { %v355_v35 = vsub.s32 7, %v1021_v4  ;;  %v352_v36 = vrot.slane %v323_v25, %v351_v39  ;;  %v375_v52 = vsub.f32 %v1121_v43, %v1203_v42  ;;  %v369_v54 = vsub.f32 %v1117_v40, %v336_v49 }
 0x159   :  { %v381_v47 = vmul.f32 1.442695, %v365_v29  ;;  %v383_v0 = vmul.f32 1.442695, %v366_v30  ;;  %v385_v33 = vmul.f32 1.442695, %v367_v32  ;;  %v370_v61 = vsub.f32 %v1119_v41, %v336_v49 }
 0x15a   :  { %v387_v56 = vmul.f32 1.442695, %v368_v51  ;;  %v356_v38 = vrot.slane %v323_v25, %v355_v35  ;;  %v377_v57 = vsub.f32 %v1133_v48, %v352_v36  ;;  %v401_v59 = vmul.f32 1.442695, %v375_v52 }
 0x15b   :  { %937 = vpow2.f32 %v381_v47  ;;  %v389_v62 = vmul.f32 1.442695, %v369_v54  ;;  %v343_v40 = vsub.s32 4, %v1021_v4  ;;  %v371_v1 = vsub.f32 %v1148_v55, %v340_v60 }
 0x15c   :  { %939 = vpow2.f32 %v383_v0  ;;  %v379_v43 = vsub.f32 %v1173_v8, %v356_v38  ;;  %v405_v63 = vmul.f32 1.442695, %v377_v57  ;;  %v391_v2 = vmul.f32 1.442695, %v370_v61 }
 0x15d   :  { %941 = vpow2.f32 %v385_v33  ;;  %v344_v41 = vrot.slane %v323_v25, %v343_v40  ;;  %v372_v6 = vsub.f32 %v1153_v58, %v340_v60  ;;  %v393_v7 = vmul.f32 1.442695, %v371_v1 }
 0x15e   :  { %943 = vpow2.f32 %v387_v56  ;;  %v409_v5 = vmul.f32 1.442695, %v379_v43  ;;  %v378_v19 = vsub.f32 %v1139_v50, %v352_v36 }
 0x15f   :  { %945 = vpow2.f32 %v401_v59  ;;  %v373_v8 = vsub.f32 %v1112_v37, %v344_v41  ;;  %v395_v10 = vmul.f32 1.442695, %v372_v6  ;;  %v374_v14 = vsub.f32 %v1106_v34, %v344_v41 }
 0x160   :  { %947 = vpow2.f32 %v389_v62  ;;  %v376_v37 = vsub.f32 %v1123_v44, %v1203_v42  ;;  %v380_v44 = vsub.f32 %v1177_v12, %v356_v38  ;;  %v407_v22 = vmul.f32 1.442695, %v378_v19 }
 0x161   :  { %949 = vpow2.f32 %v405_v63  ;;  %v397_v58 = vmul.f32 1.442695, %v373_v8  ;;  %v399_v17 = vmul.f32 1.442695, %v374_v14 }
 0x162   :  { %951 = vpow2.f32 %v391_v2  ;;  %v403_v20 = vmul.f32 1.442695, %v376_v37  ;;  %v411_v25 = vmul.f32 1.442695, %v380_v44 }
 0x163   :  { %953 = vpow2.f32 %v409_v5 }
 0x164   :  { %955 = vpow2.f32 %v393_v7 }
 0x165   :  { %957 = vpow2.f32 %v395_v10 }
 0x166   :  { %959 = vpow2.f32 %v397_v58 }
 0x167   :  { %961 = vpow2.f32 %v399_v17 }
 0x168   :  { %v1224_v3 = vpop.eup %937  ;;  %963 = vpow2.f32 %v403_v20 }
 0x169   :  { %v1226_v48 = vpop.eup %939  ;;  %430 = vperm.xlu1 %902, %v1224_v3   ;;  %965 = vpow2.f32 %v407_v22 }
 0x16a   :  { %433 = vperm.xlu0 %903, %v1226_v48   ;;  %v1233_v55 = vpop.eup %941  ;;  %967 = vpow2.f32 %v411_v25 }
 0x16b   :  { %v1237_v11 = vpop.eup %943 }
 0x16c   :  { %v1240_v13 = vpop.eup %945 }
 0x16d   :  { %436 = vperm.xlu1 %902, %v1233_v55   ;;  %v1244_v15 = vpop.eup %947 }
 0x16e   :  { %460 = vperm.xlu0 %903, %v1240_v13   ;;  %v1247_v16 = vpop.eup %949 }
 0x16f   :  { %v1252_v18 = vpop.eup %951 }
 0x170   :  { %v1255_v34 = vpop.eup %953 }
 0x171   :  { %439 = vperm.xlu1 %902, %v1237_v11   ;;  %v1259_v21 = vpop.eup %955 }
 0x172   :  { %466 = vperm.xlu0 %903, %v1247_v16   ;;  %v1263_v23 = vpop.eup %957 }
 0x173   :  { %v1266_v26 = vpop.eup %959 }
 0x174   :  { %v1269_v50 = vpop.eup %961 }
 0x175   :  { %442 = vperm.xlu1 %902, %v1244_v15   ;;  %v1272_v27 = vpop.eup %963 }
 0x176   :  { %472 = vperm.xlu0 %903, %v1255_v34   ;;  %v1275_v12 = vpop.eup %965 }
 0x177   :  { %v1278_v29 = vpop.eup %967 }
 0x179   :  { %445 = vperm.xlu1 %902, %v1252_v18  }
 0x17d   :  { %448 = vperm.xlu1 %902, %v1259_v21  }
 0x181   :  { %451 = vperm.xlu1 %902, %v1263_v23  }
 0x185   :  { %454 = vperm.xlu1 %902, %v1266_v26  }
 0x189   :  { %457 = vperm.xlu1 %902, %v1269_v50  }
 0x18d   :  { %463 = vperm.xlu1 %902, %v1272_v27  }
 0x191   :  { %469 = vperm.xlu1 %902, %v1275_v12  }
 0x195   :  { %475 = vperm.xlu1 %902, %v1278_v29  }
 0x1e4   :  { %v431_v30 = vpop.permute.xlu1 %430 }
 0x1e5   :  { %v434_v51 = vpop.permute.xlu0 %433  ;;  %v480_v61 = vrot.slane %v431_v30, %v1129_v46 }
 0x1e6   :  { %v484_v60 = vrot.slane %v434_v51, %v1126_v45 }
 0x1e8   :  { %v437_v32 = vpop.permute.xlu1 %436  ;;  %v485_v10 = vsel %vm240_vm0, %v484_v60, %v480_v61 }
 0x1e9   :  { %v461_v52 = vpop.permute.xlu0 %460  ;;  %v489_v62 = vrot.slane %v437_v32, %v1129_v46 }
 0x1ea   :  { %v525_v14 = vrot.slane %v461_v52, %v1129_v46 }
 0x1ec   :  { %v440_v42 = vpop.permute.xlu1 %439 }
 0x1ed   :  { %v493_v56 = vrot.slane %v440_v42, %v1126_v45  ;;  %v467_v38 = vpop.permute.xlu0 %466 }
 0x1ee   :  { %v534_v17 = vrot.slane %v467_v38, %v1129_v46 }
 0x1ef   :  { %v494_v2 = vsel %vm240_vm0, %v493_v56, %v489_v62 }
 0x1f0   :  { %v443_v47 = vpop.permute.xlu1 %442  ;;  %v549_v19 = vsel %vm305_vm1, %v494_v2, %v485_v10 }
 0x1f1   :  { %v498_v63 = vrot.slane %v443_v47, %v1129_v46  ;;  %v473_v20 = vpop.permute.xlu0 %472 }
 0x1f2   :  { %v543_v47 = vrot.slane %v473_v20, %v1129_v46  ;;  %v630_v20 = vld [vmem:[%s1468_s2 + $0x28] sm:$0xff] }
 0x1f4   :  { %v446_v0 = vpop.permute.xlu1 %445 }
 0x1f5   :  { %v502_v57 = vrot.slane %v446_v0, %v1126_v45 }
 0x1f7   :  { %v503_v6 = vsel %vm240_vm0, %v502_v57, %v498_v63 }
 0x1f8   :  { %v449_v49 = vpop.permute.xlu1 %448  ;;  %v550_v22 = vsel %vm307_vm2, %v503_v6, %v549_v19 }
 0x1f9   :  { %v507_v5 = vrot.slane %v449_v49, %v1129_v46 }
 0x1fc   :  { %v452_v33 = vpop.permute.xlu1 %451 }
 0x1fd   :  { %v511_v43 = vrot.slane %v452_v33, %v1126_v45 }
 0x1ff   :  { %v512_v58 = vsel %vm240_vm0, %v511_v43, %v507_v5 }
 0x200   :  { %v455_v36 = vpop.permute.xlu1 %454  ;;  %v551_v30 = vsel %vm309_vm3, %v512_v58, %v550_v22 }
 0x201   :  { %v516_v7 = vrot.slane %v455_v36, %v1129_v46 }
 0x204   :  { %v458_v54 = vpop.permute.xlu1 %457 }
 0x205   :  { %v520_v1 = vrot.slane %v458_v54, %v1126_v45 }
 0x207   :  { %v521_v44 = vsel %vm240_vm0, %v520_v1, %v516_v7 }
 0x208   :  { %v464_v59 = vpop.permute.xlu1 %463  ;;  %v552_v0 = vsel %vm311_vm4, %v521_v44, %v551_v30  ;;  %v632_v44 = vld [vmem:[%s1468_s2 + $0x38] sm:$0xff]  ;;  %v629_v30 = vld [vmem:[%s1468_s2 + $0x20] sm:$0xff] }
 0x209   :  { %v529_v41 = vrot.slane %v464_v59, %v1126_v45 }
 0x20b   :  { %v530_v25 = vsel %vm240_vm0, %v529_v41, %v525_v14 }
 0x20c   :  { %v470_v8 = vpop.permute.xlu1 %469  ;;  %v553_v51 = vsel %vm313_vm5, %v530_v25, %v552_v0 }
 0x20d   :  { %v538_v37 = vrot.slane %v470_v8, %v1126_v45 }
 0x20f   :  { %v539_v32 = vsel %vm240_vm0, %v538_v37, %v534_v17  ;;  %v625_v17 = vld [vmem:[%s1468_s2] sm:$0xff] }
 0x210   :  { %v476_v42 = vpop.permute.xlu1 %475  ;;  %v554_v36 = vsel %vm315_vm6, %v539_v32, %v553_v51  ;;  %v631_v32 = vld [vmem:[%s1468_s2 + $0x30] sm:$0xff] }
 0x211   :  { %v547_v49 = vrot.slane %v476_v42, %v1126_v45  ;;  %v634_v42 = vld [vmem:[%s1468_s2 + $0x48] sm:$0xff] }
 0x213   :  { %v548_v33 = vsel %vm240_vm0, %v547_v49, %v543_v47 }
 0x214   :  { %v555_v52 = vsel %vm317_vm7, %v548_v33, %v554_v36  ;;  %v633_v33 = vld [vmem:[%s1468_s2 + $0x40] sm:$0xff] }
 0x215   :  { %v557_v54 = vsel %vm320_vm8, %v555_v52, 0.0 }
 0x216   :  { %558 = vadd.xlane.f32.xlu0 %v557_v54 }
 0x29f   :  { %v559_v56 = vpop.xlane.xlu0 %558 }
 0x2a0   :  { %v580_v38 = vrot.slane %v559_v56, %v343_v40  ;;  %v564_v57 = vrot.slane %v559_v56, %v1025_v9  ;;  %v592_v59 = vrot.slane %v559_v56, %v355_v35  ;;  %v568_v60 = vrot.slane %v559_v56, %v331_v24 }
 0x2a1   :  { %v572_v61 = vrot.slane %v559_v56, %v335_v31  ;;  %v576_v24 = vrot.slane %v559_v56, %v339_v53 }
 0x2a2   :  { %969 = vrcp.f32 %v580_v38 }
 0x2a3   :  { %971 = vrcp.f32 %v564_v57 }
 0x2a4   :  { %973 = vrcp.f32 %v592_v59 }
 0x2a5   :  { %975 = vrcp.f32 %v568_v60 }
 0x2a6   :  { %977 = vrcp.f32 %v572_v61 }
 0x2a7   :  { %979 = vrcp.f32 %v576_v24 }
 0x2af   :  { %v970_v62 = vpop.eup %969 }
 0x2b0   :  { %v972_v43 = vpop.eup %971  ;;  %v614_v63 = vmul.f32 %v970_v62, %v1266_v26 }
 0x2b1   :  { %v974_v40 = vpop.eup %973  ;;  %v602_v9 = vmul.f32 %v972_v43, %v1224_v3  ;;  %v603_v1 = vmul.f32 %v972_v43, %v1226_v48 }
 0x2b2   :  { %683 = vperm.xlu0 %903, %v614_v63   ;;  %v623_v35 = vmul.f32 %v974_v40, %v1255_v34  ;;  %v976_v2 = vpop.eup %975  ;;  %v584_v34 = vrot.slane %v559_v56, %v347_v28 }
 0x2b3   :  { %643 = vperm.xlu1 %902, %v602_v9   ;;  %v605_v31 = vmul.f32 %v976_v2, %v1233_v55  ;;  %v606_v26 = vmul.f32 %v976_v2, %v1237_v11  ;;  %v978_v3 = vpop.eup %977  ;;  %v588_v55 = vrot.slane %v559_v56, %v351_v39  ;;  %v624_v39 = vmul.f32 %v974_v40, %v1278_v29  ;;  %v626_v29 = vld [vmem:[%s1468_s2 + $0x8] sm:$0xff]  ;;  %v635_v40 = vld [vmem:[%s1468_s2 + $0x50] sm:$0xff]  ;;  %v636_v9 = vld [vmem:[%s1468_s2 + $0x58] sm:$0xff] }
 0x2b4   :  { %v608_v5 = vmul.f32 %v978_v3, %v1244_v15  ;;  %v609_v48 = vmul.f32 %v978_v3, %v1252_v18  ;;  %981 = vrcp.f32 %v584_v34  ;;  %v980_v53 = vpop.eup %979  ;;  %v615_v15 = vmul.f32 %v970_v62, %v1269_v50 }
 0x2b5   :  { %v611_v41 = vmul.f32 %v980_v53, %v1259_v21  ;;  %v612_v11 = vmul.f32 %v980_v53, %v1263_v23  ;;  %983 = vrcp.f32 %v588_v55 }
 0x2b6   :  { %713 = vperm.xlu0 %903, %v623_v35  }
 0x2b7   :  { %648 = vperm.xlu1 %902, %v603_v1  }
 0x2bb   :  { %653 = vperm.xlu1 %902, %v605_v31  }
 0x2bf   :  { %658 = vperm.xlu1 %902, %v606_v26  }
 0x2c1   :  { %v982_v6 = vpop.eup %981 }
 0x2c2   :  { %v617_v28 = vmul.f32 %v982_v6, %v1240_v13  ;;  %v618_v18 = vmul.f32 %v982_v6, %v1272_v27  ;;  %v984_v7 = vpop.eup %983 }
 0x2c3   :  { %663 = vperm.xlu1 %902, %v608_v5   ;;  %v620_v21 = vmul.f32 %v984_v7, %v1247_v16  ;;  %v621_v4 = vmul.f32 %v984_v7, %v1275_v12  ;;  %v628_v16 = vld [vmem:[%s1468_s2 + $0x18] sm:$0xff]  ;;  %v627_v12 = vld [vmem:[%s1468_s2 + $0x10] sm:$0xff] }
 0x2c7   :  { %668 = vperm.xlu1 %902, %v609_v48  }
 0x2cb   :  { %673 = vperm.xlu1 %902, %v611_v41   ;;  %v639_v41 = vld [vmem:[%s1468_s2 + $0x70] sm:$0xff] }
 0x2cf   :  { %678 = vperm.xlu1 %902, %v612_v11  }
 0x2d3   :  { %688 = vperm.xlu1 %902, %v615_v15  }
 0x2d7   :  { %693 = vperm.xlu1 %902, %v617_v28  }
 0x2db   :  { %698 = vperm.xlu1 %902, %v618_v18  }
 0x2df   :  { %703 = vperm.xlu1 %902, %v620_v21  }
 0x2e3   :  { %708 = vperm.xlu1 %902, %v621_v4  }
 0x2e7   :  { %718 = vperm.xlu1 %902, %v624_v39  }
 0x32d   :  { %v684_v36 = vpop.permute.xlu0 %683 }
 0x32e   :  { %v1344_v23 = vpop.permute.xlu1 %643  ;;  %v729_v59 = vmul.f32 %v684_v36, %v633_v33  ;;  %v849_v48 = vrot.slane %v684_v36, %v1129_v46 }
 0x32f   :  { %v721_v47 = vmul.f32 %v1344_v23, %v625_v17  ;;  %v813_v53 = vrot.slane %v1344_v23, %v1129_v46 }
 0x331   :  { %v1408_v55 = vpop.permute.xlu0 %713 }
 0x332   :  { %v1346_v50 = vpop.permute.xlu1 %648 }
 0x333   :  { %v722_v22 = vmul.f32 %v1346_v50, %v626_v29  ;;  %v817_v26 = vrot.slane %v1346_v50, %v1126_v45 }
 0x335   :  { %v737_v52 = vadd.f32 %v722_v22, %v721_v47 }
 0x336   :  { %v654_v8 = vpop.permute.xlu1 %653 }
 0x337   :  { %v723_v19 = vmul.f32 %v654_v8, %v627_v12  ;;  %v738_v43 = vrot.slane %v737_v52, 4  ;;  %v822_v3 = vrot.slane %v654_v8, %v1129_v46  ;;  %v735_v8 = vmul.f32 %v1408_v55, %v639_v41 }
 0x339   :  { %v739_v11 = vadd.f32 %v738_v43, %v737_v52 }
 0x33a   :  { %v659_v13 = vpop.permute.xlu1 %658 }
 0x33b   :  { %v724_v58 = vmul.f32 %v659_v13, %v628_v16  ;;  %v826_v1 = vrot.slane %v659_v13, %v1126_v45  ;;  %v818_v13 = vsel %vm240_vm0, %v817_v26, %v813_v53  ;;  %v740_v29 = vrot.slane %v739_v11, 2 }
 0x33d   :  { %v744_v25 = vadd.f32 %v724_v58, %v723_v19  ;;  %v827_v28 = vsel %vm240_vm0, %v826_v1, %v822_v3  ;;  %v638_v19 = vld [vmem:[%s1468_s2 + $0x68] sm:$0xff] }
 0x33e   :  { %v1348_v10 = vpop.permute.xlu1 %663 }
 0x33f   :  { %v725_v54 = vmul.f32 %v1348_v10, %v629_v30  ;;  %v745_v57 = vrot.slane %v744_v25, 4  ;;  %v831_v16 = vrot.slane %v1348_v10, %v1129_v46 }
 0x341   :  { %v746_v35 = vadd.f32 %v745_v57, %v744_v25 }
 0x342   :  { %v1350_v27 = vpop.permute.xlu1 %668 }
 0x343   :  { %v726_v0 = vmul.f32 %v1350_v27, %v630_v20  ;;  %v747_v6 = vrot.slane %v746_v35, 2  ;;  %v835_v18 = vrot.slane %v1350_v27, %v1126_v45  ;;  %v882_v27 = vsel %vm305_vm1, %v827_v28, %v818_v13 }
 0x345   :  { %v751_v60 = vadd.f32 %v726_v0, %v725_v54  ;;  %v748_v20 = vadd.f32 %v747_v6, %v746_v35 }
 0x346   :  { %v1355_v14 = vpop.permute.xlu1 %673 }
 0x347   :  { %v727_v56 = vmul.f32 %v1355_v14, %v631_v32  ;;  %v752_v24 = vrot.slane %v751_v60, 4  ;;  %v840_v58 = vrot.slane %v1355_v14, %v1129_v46 }
 0x349   :  { %v753_v21 = vadd.f32 %v752_v24, %v751_v60 }
 0x34a   :  { %v1363_v37 = vpop.permute.xlu1 %678 }
 0x34b   :  { %v728_v49 = vmul.f32 %v1363_v37, %v632_v44  ;;  %v844_v39 = vrot.slane %v1363_v37, %v1126_v45  ;;  %v637_v37 = vld [vmem:[%s1468_s2 + $0x60] sm:$0xff]  ;;  %v836_v44 = vsel %vm240_vm0, %v835_v18, %v831_v16  ;;  %v754_v25 = vrot.slane %v753_v21, 2 }
 0x34c   :  { %v883_v33 = vsel %vm307_vm2, %v836_v44, %v882_v27 }
 0x34d   :  { %v758_v61 = vadd.f32 %v728_v49, %v727_v56  ;;  %v845_v32 = vsel %vm240_vm0, %v844_v39, %v840_v58  ;;  %v640_v56 = vld [vmem:[%s1468_s2 + $0x78] sm:$0xff] }
 0x34e   :  { %v689_v51 = vpop.permute.xlu1 %688  ;;  %v884_v57 = vsel %vm309_vm3, %v845_v32, %v883_v33 }
 0x34f   :  { %v730_v38 = vmul.f32 %v689_v51, %v634_v42  ;;  %v759_v2 = vrot.slane %v758_v61, 4  ;;  %v853_v23 = vrot.slane %v689_v51, %v1126_v45 }
 0x351   :  { %v765_v63 = vadd.f32 %v730_v38, %v729_v59  ;;  %v760_v4 = vadd.f32 %v759_v2, %v758_v61  ;;  %v854_v14 = vsel %vm240_vm0, %v853_v23, %v849_v48  ;;  %v876_v38 = vrot.slane %v1408_v55, %v1129_v46 }
 0x352   :  { %v694_v62 = vpop.permute.xlu1 %693  ;;  %v741_v61 = vadd.f32 %v740_v29, %v739_v11  ;;  %v885_v43 = vsel %vm311_vm4, %v854_v14, %v884_v57  ;;  %v749_v2 = vrot.slane %v748_v20, 1 }
 0x353   :  { %v731_v5 = vmul.f32 %v694_v62, %v635_v40  ;;  %v766_v15 = vrot.slane %v765_v63, 4  ;;  %v761_v30 = vrot.slane %v760_v4, 2  ;;  %v858_v47 = vrot.slane %v694_v62, %v1129_v46 }
 0x354   :  { %v755_v62 = vadd.f32 %v754_v25, %v753_v21  ;;  %v742_v55 = vrot.slane %v741_v61, 1  ;;  %v750_v28 = vadd.f32 %v749_v2, %v748_v20 }
 0x355   :  { %v767_v17 = vadd.f32 %v766_v15, %v765_v63 }
 0x356   :  { %v699_v31 = vpop.permute.xlu1 %698  ;;  %v756_v53 = vrot.slane %v755_v62, 1  ;;  %v743_v39 = vadd.f32 %v742_v55, %v741_v61 }
 0x357   :  { %v732_v34 = vmul.f32 %v699_v31, %v636_v9  ;;  %v862_v22 = vrot.slane %v699_v31, %v1126_v45  ;;  %v768_v36 = vrot.slane %v767_v17, 2  ;;  %v762_v9 = vadd.f32 %v761_v30, %v760_v4 }
 0x358   :  { %v757_v4 = vadd.f32 %v756_v53, %v755_v62  ;;  %v801_v16 = vsel %vm305_vm1, %v750_v28, %v743_v39 }
 0x359   :  { %v772_v7 = vadd.f32 %v732_v34, %v731_v5  ;;  %v863_v59 = vsel %vm240_vm0, %v862_v22, %v858_v47  ;;  %v769_v31 = vadd.f32 %v768_v36, %v767_v17  ;;  %v763_v11 = vrot.slane %v762_v9, 1 }
 0x35a   :  { %v704_v50 = vpop.permute.xlu1 %703  ;;  %v886_v26 = vsel %vm313_vm5, %v863_v59, %v885_v43  ;;  %v802_v27 = vsel %vm307_vm2, %v757_v4, %v801_v16 }
 0x35b   :  { %v773_v12 = vrot.slane %v772_v7, 4  ;;  %v733_v0 = vmul.f32 %v704_v50, %v637_v37  ;;  %v867_v54 = vrot.slane %v704_v50, %v1129_v46  ;;  %v764_v23 = vadd.f32 %v763_v11, %v762_v9 }
 0x35d   :  { %v774_v10 = vadd.f32 %v773_v12, %v772_v7  ;;  %v803_v17 = vsel %vm309_vm3, %v764_v23, %v802_v27 }
 0x35e   :  { %v709_v42 = vpop.permute.xlu1 %708 }
 0x35f   :  { %v734_v49 = vmul.f32 %v709_v42, %v638_v19  ;;  %v871_v51 = vrot.slane %v709_v42, %v1126_v45  ;;  %v775_v52 = vrot.slane %v774_v10, 2 }
 0x361   :  { %v779_v60 = vadd.f32 %v734_v49, %v733_v0  ;;  %v872_v63 = vsel %vm240_vm0, %v871_v51, %v867_v54  ;;  %v776_v46 = vadd.f32 %v775_v52, %v774_v10 }
 0x362   :  { %v719_v40 = vpop.permute.xlu1 %718  ;;  %v887_v5 = vsel %vm315_vm6, %v872_v63, %v886_v26 }
 0x363   :  { %v780_v35 = vrot.slane %v779_v60, 4  ;;  %v736_v1 = vmul.f32 %v719_v40, %v640_v56  ;;  %v880_v24 = vrot.slane %v719_v40, %v1126_v45  ;;  %v770_v45 = vrot.slane %v769_v31, 1 }
 0x364   :  { %v777_v18 = vrot.slane %v776_v46, 1 }
 0x365   :  { %v781_v3 = vadd.f32 %v780_v35, %v779_v60  ;;  %v786_v34 = vadd.f32 %v736_v1, %v735_v8  ;;  %v881_v48 = vsel %vm240_vm0, %v880_v24, %v876_v38  ;;  %v771_v13 = vadd.f32 %v770_v45, %v769_v31 }
 0x366   :  { %v888_v41 = vsel %vm317_vm7, %v881_v48, %v887_v5  ;;  %v778_v12 = vadd.f32 %v777_v18, %v776_v46 }
 0x367   :  { %v782_v15 = vrot.slane %v781_v3, 2  ;;  %v787_v6 = vrot.slane %v786_v34, 4  ;;  %890 = vst.msk [vmem:[%s1469_s5] sm:$0xff] %vm320_vm8, %v888_v41  ;;  %v804_v19 = vsel %vm311_vm4, %v771_v13, %v803_v17 }
 0x368   :  { %v805_v20 = vsel %vm313_vm5, %v778_v12, %v804_v19 }
 0x369   :  { %v783_v7 = vadd.f32 %v782_v15, %v781_v3  ;;  %v788_v21 = vadd.f32 %v787_v6, %v786_v34 }
 0x36b   :  { %v784_v50 = vrot.slane %v783_v7, 1  ;;  %v789_v8 = vrot.slane %v788_v21, 2 }
 0x36d   :  { %v790_v29 = vadd.f32 %v789_v8, %v788_v21  ;;  %v785_v58 = vadd.f32 %v784_v50, %v783_v7 }
 0x36f   :  { %v791_v37 = vrot.slane %v790_v29, 1  ;;  %v806_v10 = vsel %vm315_vm6, %v785_v58, %v805_v20 }
 0x371   :  { %v792_v44 = vadd.f32 %v791_v37, %v790_v29 }
 0x373   :  { %v807_v22 = vsel %vm317_vm7, %v792_v44, %v806_v10 }
 0x374   :  { %809 = vst [vmem:[%s1470_s4] sm:$0xff] %v807_v22 }

</bundles_post_ra>
